<compile_context>
chip_gen: v7x
topology: tpu7x:2x2x1
jax: 0.10.0
libtpu: 0.0.40
codegen_flags: <defaults>
</compile_context>

<pallas_src>
import functools

import jax
import jax.numpy as jnp
from jax.experimental import pallas as pl
from jax.experimental.pallas import tpu as pltpu

BN_EPS = 1e-5


def _conv_bn_relu_kernel(p_ref, w_ref, g_ref, b_ref, o_ref,
                         sum_ref, ssq_ref, scale_ref, shift_ref, *, inv_m_total):
    # p_ref:   [1, K, tM]      bf16 im2col patches (transposed: K on sublanes, M on lanes)
    # w_ref:   [Coutp, K]      bf16 conv weight
    # g_ref:   [Coutp, 1]      BN gamma (f32)
    # b_ref:   [Coutp, 1]      BN beta  (f32)
    # o_ref:   [1, Coutp, tM]  f32 output tile (lane-dense: tM is a multiple of 128)
    # scratch: per-channel running sum / sum-of-squares and folded scale / shift.
    phase = pl.program_id(0)
    first_tile = (pl.program_id(1) == 0) & (pl.program_id(2) == 0)

    @pl.when((phase == 0) & first_tile)
    def _init():
        sum_ref[...] = jnp.zeros_like(sum_ref)
        ssq_ref[...] = jnp.zeros_like(ssq_ref)

    # Conv tile on the MXU: [Coutp, K] @ [K, tM] -> [Coutp, tM], f32 accumulation.
    # Identical inputs in both phases -> bitwise-identical y -> stats are consistent.
    y = jnp.dot(w_ref[...], p_ref[0], preferred_element_type=jnp.float32)

    @pl.when(phase == 0)
    def _accumulate_stats():
        sum_ref[...] += jnp.sum(y, axis=1, keepdims=True)
        ssq_ref[...] += jnp.sum(y * y, axis=1, keepdims=True)

    @pl.when((phase == 1) & first_tile)
    def _finalize_stats():
        mean = sum_ref[...] * inv_m_total
        var = ssq_ref[...] * inv_m_total - mean * mean      # biased variance (train mode)
        scale = g_ref[...] * jax.lax.rsqrt(var + BN_EPS)    # gamma folded into inv_std
        scale_ref[...] = scale
        shift_ref[...] = b_ref[...] - mean * scale

    @pl.when(phase == 1)
    def _normalize_and_store():
        o_ref[0] = jnp.maximum(y * scale_ref[...] + shift_ref[...], 0.0).astype(o_ref.dtype)


def _pick_tile_m(m_img, cap=1024):
    """Largest multiple of 128 that divides m_img and is <= cap (else full extent)."""
    if m_img % 128 != 0:
        return m_img
    t = min(m_img, cap)
    while m_img % t != 0:
        t -= 128
    return t


@functools.partial(jax.jit, static_argnames=("stride", "padding", "dilation", "tile_m"))
def basic_conv2d(x, weight, gamma, beta, *, stride=1, padding=0, dilation=1, tile_m=None):
    """BasicConv2d forward. x: [N, Cin, H, W] NCHW; weight: [Cout, Cin, KH, KW]."""
    n, cin, h, w = x.shape
    cout, cin_w, kh, kw = weight.shape
    assert cin == cin_w
    oh = (h + 2 * padding - dilation * (kh - 1) - 1) // stride + 1
    ow = (w + 2 * padding - dilation * (kw - 1) - 1) // stride + 1
    m_img = oh * ow
    k = cin * kh * kw

    # Transposed per-image im2col in XLA: patches[N, K, M_img] with M on the lane axis.
    # K index = c*(KH*KW) + i*KW + j, matching weight.reshape(Cout, Cin*KH*KW).
    x_p = jnp.pad(x, ((0, 0), (0, 0), (padding, padding), (padding, padding)))
    cols = []
    for i in range(kh):
        for j in range(kw):
            r0, c0 = i * dilation, j * dilation
            cols.append(
                x_p[:, :, r0: r0 + stride * oh: stride, c0: c0 + stride * ow: stride])
    patches = jnp.stack(cols, axis=2).reshape(n, k, m_img).astype(jnp.bfloat16)

    # Pad Cout to a sublane multiple; padded channels have zero weight/gamma/beta and
    # produce exact zeros after the fused BN + ReLU (no NaNs: var=0 -> rsqrt(eps) finite).
    coutp = max(8, -(-cout // 8) * 8)
    w_mat = weight.reshape(cout, k)
    gamma_p, beta_p = gamma, beta
    if coutp != cout:
        w_mat = jnp.pad(w_mat, ((0, coutp - cout), (0, 0)))
        gamma_p = jnp.pad(gamma, (0, coutp - cout))
        beta_p = jnp.pad(beta, (0, coutp - cout))
    w_mat = w_mat.astype(jnp.bfloat16)
    gamma2 = gamma_p.reshape(coutp, 1).astype(jnp.float32)
    beta2 = beta_p.reshape(coutp, 1).astype(jnp.float32)

    if tile_m is None:
        tile_m = _pick_tile_m(m_img)
    assert m_img % tile_m == 0
    mt = m_img // tile_m

    m_total = n * m_img
    kernel = functools.partial(_conv_bn_relu_kernel, inv_m_total=1.0 / float(m_total))

    grid_spec = pltpu.PrefetchScalarGridSpec(
        num_scalar_prefetch=0,
        # grid = (phase, batch, m-tile). phase 0: accumulate BN stats; phase 1: normalize.
        grid=(2, n, mt),
        in_specs=[
            pl.BlockSpec((1, k, tile_m), lambda p, b, m: (b, 0, m)),
            pl.BlockSpec((coutp, k), lambda p, b, m: (0, 0)),
            pl.BlockSpec((coutp, 1), lambda p, b, m: (0, 0)),
            pl.BlockSpec((coutp, 1), lambda p, b, m: (0, 0)),
        ],
        # Phase 0 parks the (unwritten) output on block (0,0,0); since the block index
        # never changes during phase 0 and phase 1 starts at the same block, no garbage
        # tile is ever flushed to HBM. Phase 1 then walks every output block exactly once.
        out_specs=pl.BlockSpec((1, coutp, tile_m), lambda p, b, m: (p * b, 0, p * m)),
        scratch_shapes=[pltpu.VMEM((coutp, 1), jnp.float32)] * 4,
    )

    flops = 2 * 2 * m_total * k * coutp          # conv evaluated in both phases
    bytes_accessed = (2 * patches.size * 2       # bf16 patches, read in both phases
                      + w_mat.size * 2
                      + n * coutp * m_img * 4)   # f32 output
    out = pl.pallas_call(
        kernel,
        out_shape=jax.ShapeDtypeStruct((n, coutp, m_img), jnp.float32),
        grid_spec=grid_spec,
        compiler_params=pltpu.CompilerParams(
            # BN batch statistics are shared sequential state across the whole grid, so
            # every axis stays "arbitrary" (no megacore split) for correctness.
            dimension_semantics=("arbitrary", "arbitrary", "arbitrary")),
        cost_estimate=pl.CostEstimate(flops=flops, transcendentals=coutp,
                                      bytes_accessed=bytes_accessed),
    )(patches, w_mat, gamma2, beta2)

    # [N, Coutp, M_img] is already NCHW-ordered: slice channel padding, reshape. No transpose.
    return out[:, :cout, :].reshape(n, cout, oh, ow)


def _reference(x, weight, gamma, beta, *, stride, padding, dilation):
    """Pure-JAX f32 reference matching the PyTorch module in train() mode."""
    y = jax.lax.conv_general_dilated(
        x, weight, window_strides=(stride, stride),
        padding=[(padding, padding), (padding, padding)],
        rhs_dilation=(dilation, dilation),
        dimension_numbers=("NCHW", "OIHW", "NCHW"))
    mean = jnp.mean(y, axis=(0, 2, 3), keepdims=True)
    var = jnp.mean((y - mean) ** 2, axis=(0, 2, 3), keepdims=True)
    yn = (y - mean) * jax.lax.rsqrt(var + BN_EPS)
    yn = yn * gamma.reshape(1, -1, 1, 1) + beta.reshape(1, -1, 1, 1)
    return jnp.maximum(yn, 0.0)


if __name__ == "__main__":
    key = jax.random.PRNGKey(0)
    k_x, k_w = jax.random.split(key)

    # Shapes consistent with BasicConv2d(in_planes=4, out_planes=8, kernel_size=3,
    # stride=1, padding=1).
    N, CIN, H, W = 2, 4, 16, 16
    COUT, KH, KW = 8, 3, 3

    x = jax.random.normal(k_x, (N, CIN, H, W), dtype=jnp.float32)
    weight = jax.random.normal(k_w, (COUT, CIN, KH, KW), dtype=jnp.float32) * 0.1
    gamma = jnp.ones((COUT,), dtype=jnp.float32)   # BatchNorm2d default weight
    beta = jnp.zeros((COUT,), dtype=jnp.float32)   # BatchNorm2d default bias

    # tile_m=128 deliberately exercises the multi-tile two-phase path (grid = (2, 2, 2)).
    out = basic_conv2d(x, weight, gamma, beta, stride=1, padding=1, dilation=1, tile_m=128)
    jax.block_until_ready(out)
    assert out.shape == (N, COUT, H, W)

    ref = _reference(x, weight, gamma, beta, stride=1, padding=1, dilation=1)
    err = float(jnp.max(jnp.abs(out - ref)))
    # bf16 MXU operands (f32 accumulation) -> small deviation vs the f32 reference.
    assert err < 5e-2, f"max abs error {err}"
    print("KERNEL_OK")
</pallas_src>

<mosaic_0001>
module attributes {stable_mosaic.version = 11 : i64} {
  func.func @_conv_bn_relu_kernel(%arg0: i32, %arg1: i32, %arg2: i32, %arg3: memref<1x36x128xbf16, #tpu.memory_space<vmem>>, %arg4: memref<8x36xbf16, #tpu.memory_space<vmem>>, %arg5: memref<8x1xf32, #tpu.memory_space<vmem>>, %arg6: memref<8x1xf32, #tpu.memory_space<vmem>>, %arg7: memref<1x8x128xf32, #tpu.memory_space<vmem>>, %arg8: memref<8x1xf32, #tpu.memory_space<vmem>>, %arg9: memref<8x1xf32, #tpu.memory_space<vmem>>, %arg10: memref<8x1xf32, #tpu.memory_space<vmem>>, %arg11: memref<8x1xf32, #tpu.memory_space<vmem>>) attributes {dimension_semantics = [#tpu.dimension_semantics<arbitrary>, #tpu.dimension_semantics<arbitrary>, #tpu.dimension_semantics<arbitrary>], iteration_bounds = array<i64: 2, 2, 2>, scalar_prefetch = 0 : i64, scratch_operands = 4 : i64, tpu.core_type = #tpu.core_type<tc>, window_params = [{transform_indices = @transform_0, window_bounds = array<i64: 1, 36, 128>}, {pipeline_mode = #tpu.pipeline_mode<synchronous>, transform_indices = @transform_1, window_bounds = array<i64: 8, 36>}, {pipeline_mode = #tpu.pipeline_mode<synchronous>, transform_indices = @transform_2, window_bounds = array<i64: 8, 1>}, {pipeline_mode = #tpu.pipeline_mode<synchronous>, transform_indices = @transform_3, window_bounds = array<i64: 8, 1>}, {transform_indices = @transform_4, window_bounds = array<i64: 1, 8, 128>}]} {
    %c0_i32 = arith.constant 0 : i32
    %0 = arith.cmpi eq, %arg1, %c0_i32 : i32
    %c0_i32_0 = arith.constant 0 : i32
    %1 = arith.cmpi eq, %arg2, %c0_i32_0 : i32
    %2 = arith.andi %0, %1 : i1
    %c0_i32_1 = arith.constant 0 : i32
    %3 = arith.cmpi eq, %arg0, %c0_i32_1 : i32
    %4 = arith.andi %3, %2 : i1
    %5 = arith.extui %4 : i1 to i32
    %c0_i32_2 = arith.constant 0 : i32
    %6 = arith.cmpi ne, %5, %c0_i32_2 : i32
    scf.if %6 {
      %cst_12 = arith.constant 0.000000e+00 : f32
      %21 = vector.broadcast %cst_12 : f32 to vector<8x1xf32>
      %c0_13 = arith.constant 0 : index
      %c0_14 = arith.constant 0 : index
      %22 = vector.load %arg8[%c0_13, %c0_14] : memref<8x1xf32, #tpu.memory_space<vmem>>, vector<8x1xf32>
      tpu.vector_store %arg8[%c0_13, %c0_14], %21 {strides = array<i32>} : memref<8x1xf32, #tpu.memory_space<vmem>>, vector<8x1xf32>,
      %cst_15 = arith.constant 0.000000e+00 : f32
      %23 = vector.broadcast %cst_15 : f32 to vector<8x1xf32>
      %c0_16 = arith.constant 0 : index
      %c0_17 = arith.constant 0 : index
      %24 = vector.load %arg9[%c0_16, %c0_17] : memref<8x1xf32, #tpu.memory_space<vmem>>, vector<8x1xf32>
      tpu.vector_store %arg9[%c0_16, %c0_17], %23 {strides = array<i32>} : memref<8x1xf32, #tpu.memory_space<vmem>>, vector<8x1xf32>,
    } else {
    }
    %c0 = arith.constant 0 : index
    %c0_3 = arith.constant 0 : index
    %7 = vector.load %arg4[%c0, %c0_3] : memref<8x36xbf16, #tpu.memory_space<vmem>>, vector<8x36xbf16>
    %c0_4 = arith.constant 0 : index
    %c0_5 = arith.constant 0 : index
    %c0_6 = arith.constant 0 : index
    %8 = vector.load %arg3[%c0_4, %c0_5, %c0_6] : memref<1x36x128xbf16, #tpu.memory_space<vmem>>, vector<1x36x128xbf16>
    %9 = vector.shape_cast %8 : vector<1x36x128xbf16> to vector<36x128xbf16>
    %cst = arith.constant dense<0.000000e+00> : vector<8x128xf32>
    %10 = tpu.matmul %7, %9, %cst {dimension_numbers = #tpu.dot_dimension_numbers<[1], [0], [0], [1], [0, 0, 1, 1], [], []>} : vector<8x36xbf16>, vector<36x128xbf16>, vector<8x128xf32> -> vector<8x128xf32>
    %c0_i32_7 = arith.constant 0 : i32
    %11 = arith.cmpi eq, %arg0, %c0_i32_7 : i32
    %12 = arith.extui %11 : i1 to i32
    %c0_i32_8 = arith.constant 0 : i32
    %13 = arith.cmpi ne, %12, %c0_i32_8 : i32
    scf.if %13 {
      %c0_12 = arith.constant 0 : index
      %c0_13 = arith.constant 0 : index
      %21 = vector.load %arg8[%c0_12, %c0_13] : memref<8x1xf32, #tpu.memory_space<vmem>>, vector<8x1xf32>
      %cst_14 = arith.constant dense<0.000000e+00> : vector<8xf32>
      %22 = vector.multi_reduction <add>, %10, %cst_14 [1] : vector<8x128xf32> to vector<8xf32>
      %23 = vector.shape_cast %22 : vector<8xf32> to vector<8x1xf32>
      %24 = arith.addf %21, %23 : vector<8x1xf32>
      %c0_15 = arith.constant 0 : index
      %c0_16 = arith.constant 0 : index
      %25 = vector.load %arg8[%c0_15, %c0_16] : memref<8x1xf32, #tpu.memory_space<vmem>>, vector<8x1xf32>
      tpu.vector_store %arg8[%c0_15, %c0_16], %24 {strides = array<i32>} : memref<8x1xf32, #tpu.memory_space<vmem>>, vector<8x1xf32>,
      %c0_17 = arith.constant 0 : index
      %c0_18 = arith.constant 0 : index
      %26 = vector.load %arg9[%c0_17, %c0_18] : memref<8x1xf32, #tpu.memory_space<vmem>>, vector<8x1xf32>
      %27 = arith.mulf %10, %10 : vector<8x128xf32>
      %cst_19 = arith.constant dense<0.000000e+00> : vector<8xf32>
      %28 = vector.multi_reduction <add>, %27, %cst_19 [1] : vector<8x128xf32> to vector<8xf32>
      %29 = vector.shape_cast %28 : vector<8xf32> to vector<8x1xf32>
      %30 = arith.addf %26, %29 : vector<8x1xf32>
      %c0_20 = arith.constant 0 : index
      %c0_21 = arith.constant 0 : index
      %31 = vector.load %arg9[%c0_20, %c0_21] : memref<8x1xf32, #tpu.memory_space<vmem>>, vector<8x1xf32>
      tpu.vector_store %arg9[%c0_20, %c0_21], %30 {strides = array<i32>} : memref<8x1xf32, #tpu.memory_space<vmem>>, vector<8x1xf32>,
    } else {
    }
    %c1_i32 = arith.constant 1 : i32
    %14 = arith.cmpi eq, %arg0, %c1_i32 : i32
    %15 = arith.andi %14, %2 : i1
    %16 = arith.extui %15 : i1 to i32
    %c0_i32_9 = arith.constant 0 : i32
    %17 = arith.cmpi ne, %16, %c0_i32_9 : i32
    scf.if %17 {
      %c0_12 = arith.constant 0 : index
      %c0_13 = arith.constant 0 : index
      %21 = vector.load %arg8[%c0_12, %c0_13] : memref<8x1xf32, #tpu.memory_space<vmem>>, vector<8x1xf32>
      %cst_14 = arith.constant 0.001953125 : f32
      %22 = vector.broadcast %cst_14 : f32 to vector<8x1xf32>
      %23 = arith.mulf %21, %22 : vector<8x1xf32>
      %c0_15 = arith.constant 0 : index
      %c0_16 = arith.constant 0 : index
      %24 = vector.load %arg9[%c0_15, %c0_16] : memref<8x1xf32, #tpu.memory_space<vmem>>, vector<8x1xf32>
      %cst_17 = arith.constant 0.001953125 : f32
      %25 = vector.broadcast %cst_17 : f32 to vector<8x1xf32>
      %26 = arith.mulf %24, %25 : vector<8x1xf32>
      %27 = arith.mulf %23, %23 : vector<8x1xf32>
      %28 = arith.subf %26, %27 : vector<8x1xf32>
      %c0_18 = arith.constant 0 : index
      %c0_19 = arith.constant 0 : index
      %29 = vector.load %arg5[%c0_18, %c0_19] : memref<8x1xf32, #tpu.memory_space<vmem>>, vector<8x1xf32>
      %cst_20 = arith.constant 9.99999974E-6 : f32
      %30 = vector.broadcast %cst_20 : f32 to vector<8x1xf32>
      %31 = arith.addf %28, %30 : vector<8x1xf32>
      %32 = math.rsqrt %31 : vector<8x1xf32>
      %33 = arith.mulf %29, %32 : vector<8x1xf32>
      %c0_21 = arith.constant 0 : index
      %c0_22 = arith.constant 0 : index
      %34 = vector.load %arg10[%c0_21, %c0_22] : memref<8x1xf32, #tpu.memory_space<vmem>>, vector<8x1xf32>
      tpu.vector_store %arg10[%c0_21, %c0_22], %33 {strides = array<i32>} : memref<8x1xf32, #tpu.memory_space<vmem>>, vector<8x1xf32>,
      %c0_23 = arith.constant 0 : index
      %c0_24 = arith.constant 0 : index
      %35 = vector.load %arg6[%c0_23, %c0_24] : memref<8x1xf32, #tpu.memory_space<vmem>>, vector<8x1xf32>
      %36 = arith.mulf %23, %33 : vector<8x1xf32>
      %37 = arith.subf %35, %36 : vector<8x1xf32>
      %c0_25 = arith.constant 0 : index
      %c0_26 = arith.constant 0 : index
      %38 = vector.load %arg11[%c0_25, %c0_26] : memref<8x1xf32, #tpu.memory_space<vmem>>, vector<8x1xf32>
      tpu.vector_store %arg11[%c0_25, %c0_26], %37 {strides = array<i32>} : memref<8x1xf32, #tpu.memory_space<vmem>>, vector<8x1xf32>,
    } else {
    }
    %c1_i32_10 = arith.constant 1 : i32
    %18 = arith.cmpi eq, %arg0, %c1_i32_10 : i32
    %19 = arith.extui %18 : i1 to i32
    %c0_i32_11 = arith.constant 0 : i32
    %20 = arith.cmpi ne, %19, %c0_i32_11 : i32
    scf.if %20 {
      %c0_12 = arith.constant 0 : index
      %c0_13 = arith.constant 0 : index
      %21 = vector.load %arg10[%c0_12, %c0_13] : memref<8x1xf32, #tpu.memory_space<vmem>>, vector<8x1xf32>
      %22 = vector.broadcast %21 : vector<8x1xf32> to vector<8x128xf32>
      %23 = arith.mulf %10, %22 : vector<8x128xf32>
      %c0_14 = arith.constant 0 : index
      %c0_15 = arith.constant 0 : index
      %24 = vector.load %arg11[%c0_14, %c0_15] : memref<8x1xf32, #tpu.memory_space<vmem>>, vector<8x1xf32>
      %25 = vector.broadcast %24 : vector<8x1xf32> to vector<8x128xf32>
      %26 = arith.addf %23, %25 : vector<8x128xf32>
      %cst_16 = arith.constant 0.000000e+00 : f32
      %27 = vector.broadcast %cst_16 : f32 to vector<8x128xf32>
      %28 = arith.maximumf %26, %27 : vector<8x128xf32>
      %c0_17 = arith.constant 0 : index
      %c0_18 = arith.constant 0 : index
      %c0_19 = arith.constant 0 : index
      %29 = vector.load %arg7[%c0_17, %c0_18, %c0_19] : memref<1x8x128xf32, #tpu.memory_space<vmem>>, vector<1x8x128xf32>
      %30 = vector.shape_cast %29 : vector<1x8x128xf32> to vector<8x128xf32>
      %31 = vector.shape_cast %28 : vector<8x128xf32> to vector<1x8x128xf32>
      tpu.vector_store %arg7[%c0_17, %c0_18, %c0_19], %31 {strides = array<i32>} : memref<1x8x128xf32, #tpu.memory_space<vmem>>, vector<1x8x128xf32>,
    } else {
    }
    return
  }
  func.func @transform_0(%arg0: i32, %arg1: i32, %arg2: i32) -> (i32, i32, i32) {
    %c0_i32 = arith.constant 0 : i32
    %c0_i32_0 = arith.constant 0 : i32
    return %arg1, %c0_i32, %arg2 : i32, i32, i32
  }
  func.func @transform_1(%arg0: i32, %arg1: i32, %arg2: i32) -> (i32, i32) {
    %c0_i32 = arith.constant 0 : i32
    %c0_i32_0 = arith.constant 0 : i32
    %c0_i32_1 = arith.constant 0 : i32
    return %c0_i32, %c0_i32_0 : i32, i32
  }
  func.func @transform_2(%arg0: i32, %arg1: i32, %arg2: i32) -> (i32, i32) {
    %c0_i32 = arith.constant 0 : i32
    %c0_i32_0 = arith.constant 0 : i32
    %c0_i32_1 = arith.constant 0 : i32
    return %c0_i32, %c0_i32_0 : i32, i32
  }
  func.func @transform_3(%arg0: i32, %arg1: i32, %arg2: i32) -> (i32, i32) {
    %c0_i32 = arith.constant 0 : i32
    %c0_i32_0 = arith.constant 0 : i32
    %c0_i32_1 = arith.constant 0 : i32
    return %c0_i32, %c0_i32_0 : i32, i32
  }
  func.func @transform_4(%arg0: i32, %arg1: i32, %arg2: i32) -> (i32, i32, i32) {
    %0 = arith.muli %arg0, %arg1 : i32
    %1 = arith.muli %arg0, %arg2 : i32
    %c0_i32 = arith.constant 0 : i32
    %c0_i32_0 = arith.constant 0 : i32
    return %0, %c0_i32, %1 : i32, i32, i32
  }
}

</mosaic_0001>

<bundles_post_ra>
// kernel: basic_conv2d.1
= control target key start
LH: loop header
LB: loop body
LE: loop exit
PB: predicated region body
PF: predicated region fallthrough
CT: control target
= control target key end

     0   :  { %s750_s15 = smov 0   ;;  %s752_s16 = smov 0   ;;  %s891_s0 = inlined_call_operand.vmem [shape: bf16[2,36,256], index: 0, kind: input, shape index: {}]   ;;  %s892_s1 = inlined_call_operand.vmem [shape: bf16[8,36], index: 1, kind: input, shape index: {}]   ;;  %s893_s2 = inlined_call_operand.vmem [shape: f32[8,1], index: 2, kind: input, shape index: {}]   ;;  %s894_s3 = inlined_call_operand.vmem [shape: f32[8,1], index: 3, kind: input, shape index: {}]   ;;  %s895_s4 = inlined_call_operand.vmem [shape: f32[2,8,256], index: 4, kind: output, shape index: {}]  }
   0x1   :  { %s754_s17 = smov 0   ;;  %s756_s18 = smov 0  }
   0x2   :  { %s758_s19 = smov 0   ;;  %s760_s20 = smov 0  }
   0x3   :  { %s762_s21 = smov 0   ;;  %s764_s22 = smov 0  }
   0x4   :  { %s766_s23 = smov 0  }
   0x5 LB: > { %s26_s24 = sadd.s32 1, %s707_s20  ;;  %s29_s25 = sadd.s32 1, %s711_s21  ;;  %s719_s23 = sphi %s766_s23, %s14_s23   ;;  %s715_s22 = sphi %s764_s22, %s904_s22   ;;  %s711_s21 = sphi %s762_s21, %s903_s21   ;;  %s707_s20 = sphi %s760_s20, %s902_s20   ;;  %s703_s19 = sphi %s758_s19, %s901_s19   ;;  %s699_s18 = sphi %s756_s18, %s900_s18   ;;  %s695_s17 = sphi %s754_s17, %s899_s17   ;;  %s691_s16 = sphi %s752_s16, %s898_s16   ;;  %s687_s15 = sphi %s750_s15, %s897_s15  }
   0x6   : > { %p27_p0 = scmp.ge.s32.totalorder %s26_s24, 2  ;;  %p49_p1 = scmp.ne.s32.totalorder %s691_s16, %s687_s15 }
   0x7   : > { %p50_p2 = scmp.eq.s32.totalorder %s719_s23, 0  ;;  %s33_s26 = sadd.s32 1, %s715_s22 }
   0x8   : > { %s906_s24 = smov (%p27_p0, %s26_s24), 0  ;;  %s908_s25 = smov (!%p27_p0, %s29_s25), %s711_s21 }
   0x9   : > { %p31_p3 = scmp.ge.s32.totalorder %s908_s25, 2  ;;  %s38_s27 = ssub.s32 %s707_s20, %s906_s24 }
   0xa   : > { %p51_p4 = por %p50_p2, %p49_p1  ;;  %s42_s29 = sadd.s32 1, %s691_s16 }
   0xb   : > { %s910_s25 = smov (%p31_p3, %s908_s25), 0  ;;  %s912_s26 = smov (!%p31_p3, %s33_s26), %s715_s22 }
   0xc   : > { %s37_s28 = ssub.s32 %s711_s21, %s910_s25  ;;  %p35_p5 = scmp.ge.s32.totalorder %s912_s26, 2 }
   0xd   : > { %s39_s30 = sor.u32 %s38_s27, %s37_s28  ;;  %p537_p7 = scmp.ge.s32.totalorder %s719_s23, 8 }
   0xe   : > { %p40_p6 = scmp.eq.s32.totalorder %s39_s30, 0  ;;  %s914_s26 = smov (%p35_p5, %s912_s26), 0 }
   0xf   : > { %179 = sbr.rel (%p537_p7) target bundleno = 32 (0x20), region = 28 }
  0x10   : > { %s815_s5 = scalar_select %p40_p6, %s691_s16, %s42_s29  }
  0x16   : > { %182 = sbr.rel (!%p51_p4) target bundleno = 32 (0x20), region = 32  ;;  %s184_s6 = sand.u32 (%p51_p4), 1, %s691_s16  }
  0x17   : > { %s565_s7 = smul.u32 (%p51_p4), 10, %s711_s21 }
  0x18   : > { %s564_s8 = smul.u32 (%p51_p4), 20, %s184_s6 }
  0x19   : > { %s188_s9 = sadd.s32 (%p51_p4), %s707_s20, %s565_s7 }
  0x1a   : > { %s538_s10 = sshll.u32 (%p51_p4), %s188_s9, 2  ;;  %s186_s14 = scalar_lea.vmem (%p51_p4), [#allocation6], %s564_s8 }
  0x1b   : > { %s190_s13 = scalar_lea.vmem (%p51_p4), %s891_s0, %s538_s10 }
  0x1c   : > { %v206_v0 = vld [vmem:[%s190_s13] sm:$0xf] (%p51_p4)  ;;  %v208_v1 = vld [vmem:[%s190_s13 + $0x8] sm:$0xf] (%p51_p4)  ;;  %v210_v2 = vld [vmem:[%s190_s13 + $0x10] sm:$0xf] (%p51_p4) }
  0x1d   : > { %207 = vst [vmem:[%s186_s14] sm:$0xf] %v206_v0  ;;  %209 = vst [vmem:[%s186_s14 + $0x4] sm:$0xf] %v208_v1  ;;  %v212_v3 = vld [vmem:[%s190_s13 + $0x18] sm:$0xf] }
  0x1e   : > { %211 = vst [vmem:[%s186_s14 + $0x8] sm:$0xf] %v210_v2  ;;  %v214_v4 = vld [vmem:[%s190_s13 + $0x20] sm:$0xf]  ;;  %213 = vst [vmem:[%s186_s14 + $0xc] sm:$0xf] %v212_v3 }
  0x1f   : > { %215 = vst [vmem:[%s186_s14 + $0x10] sm:$0xf] %v214_v4 }
  0x20 PF: > { %p539_p8 = scmp.ge.s32.totalorder %s719_s23, 1  ;;  %p247_p9 = scmp.lt.s32.totalorder %s719_s23, 9 }
  0x22   : > { %p248_p10 = pnand %p539_p8, %p247_p9 }
  0x23   : > { %s254_s27 = sand.u32 (!%p248_p10), 1, %s687_s15   ;;  %s284_s28 = smul.u32 (!%p248_p10), %s699_s18, %s703_s19 }
  0x24   : > { %251 = sbr.rel (%p248_p10) target bundleno = 598 (0x256), region = 73  ;;  %p297_p11 = scmp.eq.s32.totalorder (!%p248_p10), %s699_s18, 0 }
  0x25   : > { %s566_s29 = smul.u32 (!%p248_p10), 20, %s254_s27  ;;  %p286_p12 = scmp.lt.s32.totalorder (!%p248_p10), %s284_s28, 1 }
  0x26   : > { %s285_s30 = smul.u32 (!%p248_p10), %s695_s17, %s703_s19  ;;  %p298_p13 = scmp.eq.s32.totalorder (!%p248_p10), %s695_s17, 0 }
  0x27   : > { %p301_p2 = scmp.eq.s32.totalorder (!%p248_p10), %s703_s19, 0  ;;  %s256_s10 = scalar_lea.vmem (!%p248_p10), [#allocation6], %s566_s29 }
  0x28   : > { %p288_p0 = scmp.lt.s32.totalorder (!%p248_p10), %s285_s30, 1  ;;  %p833_p1 = pnand (!%p248_p10), %p298_p13, %p297_p11 }
  0x2a   : > { %p300_p3 = pneg (!%p248_p10), %p833_p1 }
  0x2b   : > { %s916_s28 = smov (!%p286_p12, %s284_s28), 1  ;;  %s918_s30 = smov (!%p288_p0, %s285_s30), 1 }
  0x2c   : > { %s540_s7 = sshll.u32 %s916_s28, 1  ;;  %p302_p4 = pnand %p301_p2, %p300_p3 }
  0x2d   : > { %s291_s15 = sadd.s32 %s540_s7, %s918_s30  ;;  %vm306_vm0 = vcmask (!%p302_p4), 7168   ;;  %v721_v5 = vmov (!%p302_p4), 0.0  }
  0x2e   : > { %s541_s8 = sshll.u32 %s291_s15, 3  ;;  %305 = sbr.rel (%p302_p4) target bundleno = 53 (0x35), region = 81  ;;  %307 = vst.msk [vmem:[#allocation2] sm:$0xff] (!%p302_p4), %vm306_vm0, %v721_v5  ;;  %308 = vst.msk [vmem:[#allocation3] sm:$0xff] (!%p302_p4), %vm306_vm0, %v721_v5 }
  0x2f   : > { %s846_s9 = scalar_lea.vmem %s895_s4, %s541_s8 }
  0x35 PF: > { %v643_v6 = vld [vmem:[%s256_s10] sm:$0xff]   ;;  %v722_v7 = vmov 0.0   ;;  %v644_v8 = vld [vmem:[%s256_s10 + $0x8] sm:$0xff]   ;;  %v645_v9 = vld [vmem:[%s256_s10 + $0x10] ss:$0 sps:$4 sm:$0x33]  }
  0x36   : > { %554 = vmatprep.subr.bf16.mxu0 %v722_v7  ;;  %vm723_vm1 = vmmov 0   ;;  %vm334_vm2 = vcmask 1041408   ;;  %v309_v11 = vld [vmem:[%s892_s1] sm:$0xf]  ;;  %vm330_vm3 = vcmask 293888   ;;  %p546_p5 = scmp.ne.s32.totalorder %s703_s19, 0 }
  0x37   : > { %555 = vmatpush3.bf16.msra.mxu0 %v643_v6  ;;  %560 = vmatprep.mubr.msk.bf16.mxu0 %vm723_vm1, %v722_v7  ;;  %v336_v10 = vsel %vm334_vm2, %v645_v9, 0  ;;  %v381_v17 = vld [vmem:[#allocation2] sm:$0xff] (!%p546_p5)  ;;  %vm385_vm4 = vcmask (!%p546_p5), 7168   ;;  %v387_v20 = vld [vmem:[#allocation3] sm:$0xff] (!%p546_p5) }
  0x38   : > { %556 = vmatprep.subr.bf16.mxu0 %v722_v7 }
  0x3b   : > { %557 = vmatpush3.bf16.msra.mxu0 %v644_v8 }
  0x3c   : > { %558 = vmatprep.subr.bf16.mxu0 %v722_v7 }
  0x3f   : > { %559 = vmatpush3.bf16.msra.mxu0 %v336_v10 }
  0x42   : > { %561 = vmatmul.mubr.msk.bf16.vlgmr.msra.gmra.mrb[0].mxu0 %vm330_vm3, %v309_v11 }
 0x112   : > { %380 = sbr.rel (%p546_p5) target bundleno = 427 (0x1ab), region = 85 }
 0x115   : > { %v372_v12 = vpop.f32.mrb[0].mxu0 }
 0x116   : > { %v562_v13 = vpop.f32.mrb[1].mxu0  ;;  %382 = vadd.xlane.f32.xlu0 (!%p546_p5), %v372_v12  ;;  %v388_v16 = vmul.f32 (!%p546_p5), %v372_v12, %v372_v12 }
 0x117   : > { %v375_v14 = vpop.f32.mrb[2].mxu0 }
 0x118   : > { %v563_v15 = vpop.f32.mrb[3].mxu0 }
 0x11a   : > { %389 = vadd.xlane.f32.xlu0 %v388_v16 }
 0x1a3   : > { %v383_v18 = vpop.xlane.xlu0 %382 }
 0x1a4   : > { %v384_v19 = vadd.f32 %v383_v18, %v381_v17 }
 0x1a6   : > { %386 = vst.msk [vmem:[#allocation2] sm:$0xff] %vm385_vm4, %v384_v19 }
 0x1a7   : > { %v390_v21 = vpop.xlane.xlu0 %389 }
 0x1a8   : > { %v391_v22 = vadd.f32 %v390_v21, %v387_v20 }
 0x1aa   : > { %392 = vst.msk [vmem:[#allocation3] sm:$0xff] %vm385_vm4, %v391_v22 }
 0x1ab PF: > { %p393_p6 = scmp.eq.s32.totalorder %s703_s19, 1 }
 0x1ad   : > { %p394_p7 = pnand %p393_p6, %p300_p3 }
 0x1ae   : > { %v398_v23 = vld [vmem:[#allocation2] sm:$0xff] (!%p394_p7)  ;;  %vm408_vm5 = vcmask (!%p394_p7), 7168  }
 0x1af   : > { %397 = sbr.rel (%p394_p7) target bundleno = 458 (0x1ca), region = 89  ;;  %v399_v25 = vmul.f32 (!%p394_p7), 0.001953125, %v398_v23  ;;  %v404_v30 = vld [vmem:[%s893_s2] sm:$0xff] (!%p394_p7) }
 0x1b0   : > { %v410_v33 = vld [vmem:[%s894_s3] sm:$0xff] (!%p394_p7) }
 0x1b1   : > { %v400_v24 = vld [vmem:[#allocation3] sm:$0xff] (!%p394_p7)  ;;  %v402_v27 = vmul.f32 (!%p394_p7), %v399_v25, %v399_v25 }
 0x1b2   : > { %v401_v26 = vmul.f32 (!%p394_p7), 0.001953125, %v400_v24 }
 0x1b4   : > { %v403_v28 = vsub.f32 (!%p394_p7), %v401_v26, %v402_v27 }
 0x1b6   : > { %v405_v29 = vadd.f32 1e-05, %v403_v28 }
 0x1b8   : > { %646 = vrsqrt.f32 %v405_v29 }
 0x1c2   : > { %v647_v31 = vpop.eup %646 }
 0x1c3   : > { %v407_v32 = vmul.f32 %v647_v31, %v404_v30 }
 0x1c5   : > { %409 = vst.msk [vmem:[#allocation4] sm:$0xff] %vm408_vm5, %v407_v32  ;;  %v411_v34 = vmul.f32 %v407_v32, %v399_v25 }
 0x1c7   : > { %v412_v35 = vsub.f32 %v410_v33, %v411_v34 }
 0x1c9   : > { %413 = vst.msk [vmem:[#allocation5] sm:$0xff] %vm408_vm5, %v412_v35 }
 0x1ca PF: > { %p547_p8 = scmp.ne.s32.totalorder %s703_s19, 1 }
 0x1cb   : > { %v724_v37 = vmov (!%p547_p8), 0  }
 0x1cc   : > { %416 = sbr.rel (%p547_p8) target bundleno = 598 (0x256), region = 93  ;;  %v417_v36 = vld [vmem:[#allocation4] sm:$0xff] (!%p547_p8)  ;;  %648 = vset.pattern.permute.xlu0 (!%p547_p8), %v724_v37 }
 0x1cd   : > { %420 = vperm.xlu0 (!%p547_p8), %648, %v417_v36  }
 0x1d0   : > { %v424_v38 = vld [vmem:[#allocation5] sm:$0xff] (!%p547_p8) }
 0x1d1   : > { %427 = vperm.xlu0 (!%p547_p8), %648, %v424_v38  }
 0x24c   : > { %v421_v39 = vpop.permute.xlu0 %420 }
 0x24d   : > { %v423_v40 = vmul.f32 %v421_v39, %v372_v12 }
 0x250   : > { %v428_v41 = vpop.permute.xlu0 %427 }
 0x251   : > { %v430_v42 = vadd.f32 %v428_v41, %v423_v40 }
 0x253   : > { %v431_v43 = vmax.f32 %v430_v42, 0.0 }
 0x255   : > { %432 = vst [vmem:[%s846_s9] sm:$0xff] %v431_v43 }
 0x256 PF: > { %s14_s23 = sadd.s32 1, %s719_s23   ;;  %s897_s15 = smov %s691_s16 }
 0x257   : > { %p11_p9 = scmp.ge.s32.totalorder %s14_s23, 10   ;;  %s898_s16 = smov %s815_s5 }
 0x258   : > { %s899_s17 = smov %s707_s20  ;;  %s900_s18 = smov %s711_s21 }
 0x259   : > { %s901_s19 = smov %s715_s22  ;;  %s902_s20 = smov %s906_s24 }
 0x25a   : > { %s903_s21 = smov %s910_s25  ;;  %s904_s22 = smov %s914_s26 }
 0x25b   :  { %13 = sbr.rel (!%p11_p9) target bundleno = 5 (0x5), region = 128 }

</bundles_post_ra>
